<compile_context>
chip_gen: v6e
topology: v6e:2x2x1
jax: 0.10.0
libtpu: 0.0.40
codegen_flags: <defaults>
</compile_context>

<pallas_src>
import functools

import jax
import jax.numpy as jnp
from jax.experimental import pallas as pl
from jax.experimental.pallas import tpu as pltpu


# --------------------------------------------------------------------------
# Kernels
# --------------------------------------------------------------------------
def _linear_vpu_kernel(x_ref, wb_ref, o_ref, *, in_dim: int, add_one: bool):
    """Small-IN path: pure VPU broadcast FMAs, no MXU.

    x_ref:  (TN, IN)      VMEM
    wb_ref: (IN+1, OUT)   VMEM  -- rows 0..IN-1 are W^T rows, row IN is bias
    o_ref:  (TN, OUT)     VMEM
    """
    bias = wb_ref[pl.ds(in_dim, 1), :]                         # (1, OUT)
    acc = x_ref[:, pl.ds(0, 1)] * wb_ref[pl.ds(0, 1), :] + bias  # (TN,1)*(1,OUT)
    for k in range(1, in_dim):                                  # static unroll, IN<=8
        acc = acc + x_ref[:, pl.ds(k, 1)] * wb_ref[pl.ds(k, 1), :]
    if add_one:
        acc = acc + 1.0
    o_ref[...] = acc.astype(o_ref.dtype)


def _linear_mxu_kernel(x_ref, wt_ref, b_ref, o_ref, *, add_one: bool):
    """General path (IN > 8): MXU matmul against a (IN, OUT) weight layout,
    so the contraction is on the RHS major dim (no in-kernel transpose)."""
    y = jnp.dot(x_ref[...], wt_ref[...], preferred_element_type=jnp.float32)
    y = y + b_ref[...]
    if add_one:
        y = y + 1.0
    o_ref[...] = y.astype(o_ref.dtype)


# --------------------------------------------------------------------------
# Wrapper
# --------------------------------------------------------------------------
_TILE_N = 512  # row tile when N is large enough to warrant a grid


def _vmem_limit_bytes() -> int:
    try:
        cap = pltpu.get_tpu_info().vmem_capacity_bytes
    except Exception:
        cap = 64 << 20
    # leave headroom for scratch / double-buffering
    return min(64 << 20, (cap * 3) // 4)


@functools.partial(jax.jit, static_argnames=("grad_error",))
def model_forward(x, weight, bias, *, grad_error: bool):
    """Pallas equivalent of Model(grad_error).forward(x).

    x:      (N, IN)   float32
    weight: (OUT, IN) float32   (PyTorch nn.Linear layout)
    bias:   (OUT,)    float32
    returns (N, OUT)  float32
    """
    n, in_dim = x.shape
    out_dim, in_dim_w = weight.shape
    assert in_dim == in_dim_w

    itemsize = jnp.dtype(jnp.float32).itemsize
    cost = pl.CostEstimate(
        flops=2 * n * in_dim * out_dim,
        transcendentals=0,
        bytes_accessed=itemsize * (n * in_dim + (in_dim + 1) * out_dim + n * out_dim),
    )

    # Tile over N only when it pays for itself and divides evenly; the parallel
    # axis shards across v7x's two TensorCores and keeps per-step VMEM small
    # (also avoids the lane-sparse (N,1) footprint blow-up at large N).
    use_grid = (n >= 2 * _TILE_N) and (n % _TILE_N == 0)

    vmem_spec = pl.BlockSpec(memory_space=pltpu.MemorySpace.VMEM)
    out_shape = jax.ShapeDtypeStruct((n, out_dim), jnp.float32)

    if in_dim <= 8:
        # --- VPU path: pack W^T and bias into one (IN+1, OUT) operand -------
        # For IN==1 the (OUT,1)->(1,OUT) view is a pure reshape (same linear
        # order); for 1<IN<=8 the tiny transpose is a one-off under jit.
        w_io = weight.reshape(1, out_dim) if in_dim == 1 else weight.T
        wb = jnp.concatenate([w_io, bias.reshape(1, out_dim)], axis=0)
        kernel = functools.partial(_linear_vpu_kernel, in_dim=in_dim,
                                   add_one=grad_error)

        if use_grid:
            return pl.pallas_call(
                kernel,
                out_shape=out_shape,
                grid=(n // _TILE_N,),
                in_specs=[
                    pl.BlockSpec((_TILE_N, in_dim), lambda i: (i, 0)),
                    pl.BlockSpec((in_dim + 1, out_dim), lambda i: (0, 0)),
                ],
                out_specs=pl.BlockSpec((_TILE_N, out_dim), lambda i: (i, 0)),
                compiler_params=pltpu.CompilerParams(
                    dimension_semantics=("parallel",)),
                cost_estimate=cost,
            )(x, wb)

        # Tiny problem: grid-less, everything resident in VMEM.
        # NOTE: OUT=3 (<128 lanes) forces masked output stores, but that is
        # fixed by the module's output shape.
        return pl.pallas_call(
            kernel,
            out_shape=out_shape,
            in_specs=[vmem_spec, vmem_spec],
            out_specs=vmem_spec,
            cost_estimate=cost,
        )(x, wb)

    # --- General MXU path (IN > 8) ------------------------------------------
    wt = weight.T                      # one-time (OUT,IN)->(IN,OUT) layout fix
    b2 = bias.reshape(1, out_dim)
    kernel = functools.partial(_linear_mxu_kernel, add_one=grad_error)
    cparams_kw = dict(vmem_limit_bytes=_vmem_limit_bytes())
    # TODO(synk): for very large IN*OUT a full 3-D (M,N,K) tiled grid with a
    # VMEM f32 accumulator would be needed; weight stays resident here.

    if use_grid:
        return pl.pallas_call(
            kernel,
            out_shape=out_shape,
            grid=(n // _TILE_N,),
            in_specs=[
                pl.BlockSpec((_TILE_N, in_dim), lambda i: (i, 0)),
                pl.BlockSpec((in_dim, out_dim), lambda i: (0, 0)),
                pl.BlockSpec((1, out_dim), lambda i: (0, 0)),
            ],
            out_specs=pl.BlockSpec((_TILE_N, out_dim), lambda i: (i, 0)),
            compiler_params=pltpu.CompilerParams(
                dimension_semantics=("parallel",), **cparams_kw),
            cost_estimate=cost,
        )(x, wt, b2)

    return pl.pallas_call(
        kernel,
        out_shape=out_shape,
        in_specs=[vmem_spec, vmem_spec, vmem_spec],
        out_specs=vmem_spec,
        compiler_params=pltpu.CompilerParams(**cparams_kw),
        cost_estimate=cost,
    )(x, wt, b2)


# --------------------------------------------------------------------------
# Self-test
# --------------------------------------------------------------------------
if __name__ == "__main__":
    key = jax.random.PRNGKey(0)
    k_x, k_w, k_b = jax.random.split(key, 3)

    N, IN, OUT = 8, 1, 3  # matches nn.Linear(1, 3)

    x = jax.random.normal(k_x, (N, IN), dtype=jnp.float32)
    # deterministic init, bounded like torch.nn.Linear's default
    bound = 1.0 / jnp.sqrt(jnp.float32(IN))
    weight = jax.random.uniform(k_w, (OUT, IN), jnp.float32, -bound, bound)
    bias = jax.random.uniform(k_b, (OUT,), jnp.float32, -bound, bound)

    # grad_error=False branch: plain linear
    y0 = model_forward(x, weight, bias, grad_error=False)
    # grad_error=True branch: ErroneousFunc forward == linear + 1.0
    y1 = model_forward(x, weight, bias, grad_error=True)

    jax.block_until_ready((y0, y1))

    # reference check against plain JAX
    ref0 = x @ weight.T + bias
    ref1 = ref0 + 1.0
    assert jnp.allclose(y0, ref0, atol=1e-5), "mismatch (grad_error=False)"
    assert jnp.allclose(y1, ref1, atol=1e-5), "mismatch (grad_error=True)"

    # TODO(synk): ErroneousFunc's NaN-producing backward is custom-gradient
    # behavior with no forward-pass Pallas equivalent; only forward is implemented.

    print("KERNEL_OK")
</pallas_src>

<mosaic_0001>
module attributes {stable_mosaic.version = 11 : i64} {
  func.func @_linear_vpu_kernel(%arg0: memref<8x1xf32, #tpu.memory_space<vmem>>, %arg1: memref<2x3xf32, #tpu.memory_space<vmem>>, %arg2: memref<8x3xf32, #tpu.memory_space<vmem>>) attributes {dimension_semantics = [], scalar_prefetch = 0 : i64, scratch_operands = 0 : i64, tpu.core_type = #tpu.core_type<tc>} {
    %c1 = arith.constant 1 : index
    %c0 = arith.constant 0 : index
    %0 = vector.load %arg1[%c1, %c0] : memref<2x3xf32, #tpu.memory_space<vmem>>, vector<1x3xf32>
    %c0_0 = arith.constant 0 : index
    %c0_1 = arith.constant 0 : index
    %1 = vector.load %arg0[%c0_0, %c0_1] : memref<8x1xf32, #tpu.memory_space<vmem>>, vector<8x1xf32>
    %c0_2 = arith.constant 0 : index
    %c0_3 = arith.constant 0 : index
    %2 = vector.load %arg1[%c0_2, %c0_3] : memref<2x3xf32, #tpu.memory_space<vmem>>, vector<1x3xf32>
    %3 = vector.broadcast %1 : vector<8x1xf32> to vector<8x3xf32>
    %4 = vector.broadcast %2 : vector<1x3xf32> to vector<8x3xf32>
    %5 = arith.mulf %3, %4 : vector<8x3xf32>
    %6 = vector.broadcast %0 : vector<1x3xf32> to vector<8x3xf32>
    %7 = arith.addf %5, %6 : vector<8x3xf32>
    %c0_4 = arith.constant 0 : index
    %c0_5 = arith.constant 0 : index
    %8 = vector.load %arg2[%c0_4, %c0_5] : memref<8x3xf32, #tpu.memory_space<vmem>>, vector<8x3xf32>
    tpu.vector_store %arg2[%c0_4, %c0_5], %7 {strides = array<i32>} : memref<8x3xf32, #tpu.memory_space<vmem>>, vector<8x3xf32>,
    return
  }
}

</mosaic_0001>

<bundles_post_ra>
// kernel: model_forward.1
= control target key start
LH: loop header
LB: loop body
LE: loop exit
PB: predicated region body
PF: predicated region fallthrough
CT: control target
= control target key end

     0   :  { %v39_v0 = vmov 0   ;;  %vm29_vm0 = vcmask 23552   ;;  %s67_s0 = inlined_call_operand.vmem [shape: f32[8,1], index: 0, kind: input, shape index: {}]   ;;  %s68_s1 = inlined_call_operand.vmem [shape: f32[2,3], index: 1, kind: input, shape index: {}]   ;;  %s69_s2 = inlined_call_operand.vmem [shape: f32[8,3], index: 2, kind: output, shape index: {}]  }
   0x1   :  { %38 = vset.pattern.permute.xlu0 %v39_v0  ;;  %v12_v1 = vld [vmem:[%s67_s0] sm:$0xff] }
   0x2   :  { %16 = vperm.xlu0 %38, %v12_v1   ;;  %v35_v2 = vld [vmem:[%s68_s1] ss:$0 sm:$0xff]  ;;  %v36_v3 = vld [vmem:[%s68_s1 + $0x1] ss:$0 sm:$0xff] }
  0x7d   :  { %v17_v4 = vpop.permute.xlu0 %16 }
  0x7e   :  { %v23_v5 = vmul.f32 %v35_v2, %v17_v4 }
  0x80   :  { %v28_v6 = vadd.f32 %v36_v3, %v23_v5 }
  0x82   :  { %30 = vst.msk [vmem:[%s69_s2] sm:$0xff] %vm29_vm0, %v28_v6 }

</bundles_post_ra>
